<compile_context>
chip_gen: v6e
topology: v6e:2x2x1
jax: 0.10.0
libtpu: 0.0.40
codegen_flags: <defaults>
</compile_context>

<pallas_src>
import jax
import jax.numpy as jnp
from jax.experimental import pallas as pl
from jax.experimental.pallas import tpu as pltpu

LANE = 128
SUBLANE = 8


def _round_up(x, m):
    return ((x + m - 1) // m) * m


def _node_tile(n):
    # measured tile-size sweep: bigger is better until VMEM; 128 floor for tiny graphs.
    if n <= 128:
        return 128
    if n <= 1024:
        return 256
    return 512


def _vmem_capacity_bytes():
    try:
        return int(pltpu.get_tpu_info().vmem_capacity_bytes)
    except Exception:
        return 64 * 1024 * 1024   # conservative fallback (v7x per-core VMEM)


# ------------------------------- fused kernel -------------------------------- #

def _make_kernel(a_resident, num_layers, tile, np_pad, n_valid):
    """Builds the fused GNN kernel. `a_resident` selects resident vs streamed A_hat."""

    def kernel(a_ref, x_ref, w_ref, b_ref, p_ref, wl_ref, bl_ref, o_ref, *scratch):
        if a_resident:
            a_vmem, xw_ref, h_ref, acc_ref, pooled_ref = scratch
        else:
            xw_ref, h_ref, acc_ref, pooled_ref = scratch

        l = pl.program_id(0)     # layer
        i = pl.program_id(1)     # A_hat row tile
        k = pl.program_id(2)     # contraction (node) tile
        ni = pl.num_programs(1)
        nk = pl.num_programs(2)

        # ---- one-time setup at the very first grid step --------------------------
        @pl.when((l == 0) & (i == 0) & (k == 0))
        def _init():
            pooled_ref[...] = jnp.zeros_like(pooled_ref)
            # x (HBM, bf16) -> H slot 0 (layer 0's read slot). One DMA, once.
            pltpu.sync_copy(x_ref, h_ref.at[pl.ds(0, np_pad), :])
            if a_resident:
                # Whole normalized adjacency resident in VMEM: read from HBM once,
                # reused by every layer (removes the dominant N^2 re-stream).
                pltpu.sync_copy(a_ref, a_vmem)

        # ---- stage 1: cache XW (bf16) for node strip k, once per layer ------------
        @pl.when(i == 0)
        def _cache_xw():
            src = (l % 2) * np_pad + k * tile
            hs = h_ref[pl.ds(pl.multiple_of(src, tile), tile), :]            # bf16
            xw = jnp.dot(hs, w_ref[0], preferred_element_type=jnp.float32)   # bf16 MXU
            xw_ref[pl.ds(pl.multiple_of(k * tile, tile), tile), :] = xw.astype(jnp.bfloat16)

        # ---- stage 2: acc += A_hat[i, k] @ XW[k]   (bf16 x bf16 -> f32 on MXU) ----
        @pl.when(k == 0)
        def _zero_acc():
            acc_ref[...] = jnp.zeros_like(acc_ref)

        if a_resident:
            a_tile = a_vmem[pl.ds(pl.multiple_of(i * tile, tile), tile),
                            pl.ds(pl.multiple_of(k * tile, tile), tile)]
        else:
            a_tile = a_ref[...]
        xw_k = xw_ref[pl.ds(pl.multiple_of(k * tile, tile), tile), :]
        acc_ref[...] += jnp.dot(a_tile, xw_k, preferred_element_type=jnp.float32)

        # ---- stage 3: bias + ReLU -> H; pool + head on the last layer -------------
        @pl.when(k == nk - 1)
        def _finalize():
            h_new = jnp.maximum(acc_ref[...] + b_ref[0], 0.0)                # f32 (T,Hp)
            if n_valid < np_pad:
                rows = jax.lax.broadcasted_iota(jnp.int32, (tile, 1), 0) + i * tile
                h_new = jnp.where(rows < n_valid, h_new, 0.0)                # mask pad rows
            dst = ((l + 1) % 2) * np_pad + i * tile
            h_ref[pl.ds(pl.multiple_of(dst, tile), tile), :] = h_new.astype(jnp.bfloat16)

            @pl.when(l == num_layers - 1)
            def _pool():
                pooled_ref[...] += jnp.dot(p_ref[...], h_new.astype(jnp.bfloat16),
                                           preferred_element_type=jnp.float32)

                @pl.when(i == ni - 1)
                def _head():
                    o_ref[...] = (jnp.dot(pooled_ref[...], wl_ref[...],
                                          preferred_element_type=jnp.float32)
                                  + bl_ref[...])

    return kernel


# ------------------------------ wrapper ------------------------------------- #

def simple_gnn_forward(x, edge_index, batch, conv_params, lin_params, num_graphs,
                       a_resident=None):
    n, f_in = x.shape
    hidden = conv_params[0][0].shape[1]
    num_layers = len(conv_params)
    w_lin, b_lin = lin_params

    tile = _node_tile(n)
    np_pad = _round_up(n, tile)
    hp = _round_up(max(hidden, f_in), LANE)
    gp = _round_up(num_graphs, SUBLANE)

    a_hat = build_norm_adjacency(edge_index, n)          # f32 [N, N]
    pool = build_pool_matrix(batch, num_graphs)          # f32 [G, N]

    # bf16 operands for everything on the MXU path (f32 accumulation in-kernel).
    a_pad = jnp.zeros((np_pad, np_pad), jnp.bfloat16).at[:n, :n].set(a_hat.astype(jnp.bfloat16))
    x_pad = jnp.zeros((np_pad, hp), jnp.bfloat16).at[:n, :f_in].set(x.astype(jnp.bfloat16))
    p_pad = jnp.zeros((gp, np_pad), jnp.bfloat16).at[:num_graphs, :n].set(pool.astype(jnp.bfloat16))

    w_stack = jnp.zeros((num_layers, hp, hp), jnp.bfloat16)
    b_stack = jnp.zeros((num_layers, 1, hp), jnp.float32)
    for li, (w, b) in enumerate(conv_params):
        fi, fo = w.shape
        w_stack = w_stack.at[li, :fi, :fo].set(w.astype(jnp.bfloat16))
        b_stack = b_stack.at[li, 0, :fo].set(b.reshape(-1))

    wl_pad = jnp.zeros((hp, LANE), jnp.float32).at[:hidden, 0].set(w_lin.reshape(-1))
    bl_pad = jnp.zeros((1, LANE), jnp.float32).at[0, 0].set(b_lin.reshape(-1)[0])

    # Generation-aware VMEM budget (≈85% of physical per-core VMEM).
    vmem_cap = _vmem_capacity_bytes()
    vmem_limit = int(0.85 * vmem_cap)

    # Decide whether A_hat fits resident in VMEM alongside the other scratch.
    resident_bytes = (np_pad * np_pad * 2            # resident A_hat (bf16)
                      + 3 * np_pad * hp * 2          # XW cache + H ping-pong (bf16)
                      + tile * hp * 4 + gp * hp * 4) # f32 accumulators
    stream_bytes = (2 * (hp * hp * 2 + hp * 4 + gp * tile * 2
                         + hp * LANE * 4 + LANE * 4) + gp * LANE * 4)
    if a_resident is None:
        a_resident = (resident_bytes + stream_bytes) <= int(0.70 * vmem_cap)
    a_resident = bool(a_resident)

    grid = (num_layers, np_pad // tile, np_pad // tile)
    last_layer = num_layers - 1

    # Pooling matrix: fetched per row tile only on the last layer, pinned otherwise.
    def p_index(l, i, k):
        return (0, jnp.where(l == last_layer, i, 0))

    if a_resident:
        a_spec = pl.BlockSpec(memory_space=pl.ANY)
        extra_scratch = [pltpu.VMEM((np_pad, np_pad), jnp.bfloat16)]
    else:
        try:
            a_spec = pl.BlockSpec((tile, tile), lambda l, i, k: (i, k),
                                  pipeline_mode=pl.Buffered(3))
        except TypeError:
            a_spec = pl.BlockSpec((tile, tile), lambda l, i, k: (i, k))
        extra_scratch = []

    in_specs = [
        a_spec,                                                   # A_hat (resident or streamed)
        pl.BlockSpec(memory_space=pl.ANY),                        # x stays in HBM, DMA'd once
        pl.BlockSpec((1, hp, hp), lambda l, i, k: (l, 0, 0)),     # W_l (bf16)
        pl.BlockSpec((1, 1, hp), lambda l, i, k: (l, 0, 0)),      # b_l (f32)
        pl.BlockSpec((gp, tile), p_index),                        # pooling columns (bf16)
        pl.BlockSpec((hp, LANE), lambda l, i, k: (0, 0)),         # head weight (lane-padded)
        pl.BlockSpec((1, LANE), lambda l, i, k: (0, 0)),          # head bias
    ]

    scratch_shapes = extra_scratch + [
        pltpu.VMEM((np_pad, hp), jnp.bfloat16),       # cached XW for current layer
        pltpu.VMEM((2 * np_pad, hp), jnp.bfloat16),   # ping-pong activations H
        pltpu.VMEM((tile, hp), jnp.float32),          # A@XW row-tile accumulator
        pltpu.VMEM((gp, hp), jnp.float32),            # pooled accumulator
    ]

    a_reads = 1 if a_resident else num_layers
    flops = (2 * num_layers * (np_pad * np_pad * hp + np_pad * hp * hp)
             + 2 * gp * np_pad * hp + 2 * gp * hp * LANE)
    bytes_accessed = (a_reads * np_pad * np_pad * 2 + np_pad * hp * 2
                      + num_layers * (hp * hp * 2 + hp * 4) + gp * np_pad * 2
                      + hp * LANE * 4 + LANE * 4 + gp * LANE * 4)

    kernel = _make_kernel(a_resident, num_layers, tile, np_pad, n)

    out_pad = pl.pallas_call(
        kernel,
        out_shape=jax.ShapeDtypeStruct((gp, LANE), jnp.float32),
        grid_spec=pltpu.PrefetchScalarGridSpec(
            num_scalar_prefetch=0,
            grid=grid,
            in_specs=in_specs,
            out_specs=pl.BlockSpec((gp, LANE), lambda l, i, k: (0, 0)),
            scratch_shapes=scratch_shapes,
        ),
        compiler_params=pltpu.CompilerParams(
            # Intermediates live in per-core VMEM scratch -> all axes carry deps.
            dimension_semantics=("arbitrary", "arbitrary", "arbitrary"),
            vmem_limit_bytes=vmem_limit,
        ),
        cost_estimate=pl.CostEstimate(flops=flops, transcendentals=0,
                                      bytes_accessed=bytes_accessed),
    )(a_pad, x_pad, w_stack, b_stack, p_pad, wl_pad, bl_pad)

    return out_pad[:num_graphs, 0]                          # [G]


# ------------------------------ glue (plain JAX) ----------------------------- #

def build_norm_adjacency(edge_index, num_nodes):
    """Dense A_hat = D^{-1/2} (A + I) D^{-1/2} from a [2, E] edge_index (undirected)."""
    src, dst = edge_index[0], edge_index[1]
    a = jnp.zeros((num_nodes, num_nodes), jnp.float32)
    a = a.at[dst, src].add(1.0)                       # messages flow src -> dst
    a = a + jnp.eye(num_nodes, dtype=jnp.float32)     # add self-loops
    deg = jnp.sum(a, axis=1)
    d_inv_sqrt = jnp.where(deg > 0, 1.0 / jnp.sqrt(deg), 0.0)
    return d_inv_sqrt[:, None] * a * d_inv_sqrt[None, :]


def build_pool_matrix(batch, num_graphs):
    """P[g, n] = (batch[n] == g) / count[g]  -> mean pooling as a matmul."""
    onehot = (batch[None, :] == jnp.arange(num_graphs)[:, None]).astype(jnp.float32)
    counts = jnp.maximum(jnp.sum(onehot, axis=1, keepdims=True), 1.0)
    return onehot / counts


def init_params(key, input_dim, hidden_dim, num_layers):
    params = []
    dims = [input_dim] + [hidden_dim] * num_layers
    for layer in range(num_layers):
        key, kw = jax.random.split(key)
        fin, fout = dims[layer], dims[layer + 1]
        w = jax.random.normal(kw, (fin, fout), jnp.float32) * (1.0 / jnp.sqrt(fin))
        b = jnp.zeros((1, fout), jnp.float32)
        params.append((w, b))
    key, kw = jax.random.split(key)
    w_lin = jax.random.normal(kw, (hidden_dim, 1), jnp.float32) * (1.0 / jnp.sqrt(hidden_dim))
    b_lin = jnp.zeros((1, 1), jnp.float32)
    return params, (w_lin, b_lin)


# Pure-f32 JAX reference (same math as the PyTorch module, no Pallas, no bf16).
def _reference(x, edge_index, batch, conv_params, lin_params, num_graphs):
    a_hat = build_norm_adjacency(edge_index, x.shape[0])
    pool_mat = build_pool_matrix(batch, num_graphs)
    h = x
    for (w, b) in conv_params:
        h = jnp.maximum(a_hat @ (h @ w) + b, 0.0)
    return (pool_mat @ h @ lin_params[0] + lin_params[1]).squeeze(-1)


if __name__ == "__main__":
    key = jax.random.PRNGKey(0)

    # Small synthetic batched graph: 2 graphs, 8 nodes each, ring topology (undirected).
    num_nodes, input_dim, hidden_dim, num_layers, num_graphs = 16, 4, 32, 4, 2

    def ring_edges(offset, nn):
        src = jnp.arange(nn) + offset
        dst = (jnp.arange(nn) + 1) % nn + offset
        fwd = jnp.stack([src, dst])
        bwd = jnp.stack([dst, src])
        return jnp.concatenate([fwd, bwd], axis=1)

    edge_index = jnp.concatenate([ring_edges(0, 8), ring_edges(8, 8)], axis=1).astype(jnp.int32)
    batch = jnp.concatenate([jnp.zeros(8, jnp.int32), jnp.ones(8, jnp.int32)])

    key, kx = jax.random.split(key)
    x = jax.random.normal(kx, (num_nodes, input_dim), jnp.float32)

    conv_params, lin_params = init_params(key, input_dim, hidden_dim, num_layers)

    ref = _reference(x, edge_index, batch, conv_params, lin_params, num_graphs)

    # Resident-A_hat path (auto-selected at this size on every generation).
    out_res = jax.block_until_ready(
        simple_gnn_forward(x, edge_index, batch, conv_params, lin_params, num_graphs))
    # Streamed-A_hat fallback path (forced) -> exercises the large-graph code path too.
    out_str = jax.block_until_ready(
        simple_gnn_forward(x, edge_index, batch, conv_params, lin_params, num_graphs,
                           a_resident=False))

    assert out_res.shape == (num_graphs,)
    assert out_str.shape == (num_graphs,)
    # bf16 A_hat / x / W / H with f32 accumulation -> loosened tolerance vs f32 reference.
    assert jnp.allclose(out_res, ref, atol=5e-2, rtol=5e-2), (out_res, ref)
    assert jnp.allclose(out_str, ref, atol=5e-2, rtol=5e-2), (out_str, ref)

    print("KERNEL_OK")
</pallas_src>

<mosaic_0001>
module attributes {stable_mosaic.version = 11 : i64} {
  func.func @kernel(%arg0: i32, %arg1: i32, %arg2: i32, %arg3: memref<128x128xbf16, #tpu.memory_space<any>>, %arg4: memref<128x128xbf16, #tpu.memory_space<any>>, %arg5: memref<1x128x128xbf16, #tpu.memory_space<vmem>>, %arg6: memref<1x1x128xf32, #tpu.memory_space<vmem>>, %arg7: memref<8x128xbf16, #tpu.memory_space<vmem>>, %arg8: memref<128x128xf32, #tpu.memory_space<vmem>>, %arg9: memref<1x128xf32, #tpu.memory_space<vmem>>, %arg10: memref<8x128xf32, #tpu.memory_space<vmem>>, %arg11: memref<128x128xbf16, #tpu.memory_space<vmem>>, %arg12: memref<128x128xbf16, #tpu.memory_space<vmem>>, %arg13: memref<256x128xbf16, #tpu.memory_space<vmem>>, %arg14: memref<128x128xf32, #tpu.memory_space<vmem>>, %arg15: memref<8x128xf32, #tpu.memory_space<vmem>>) attributes {dimension_semantics = [#tpu.dimension_semantics<arbitrary>, #tpu.dimension_semantics<arbitrary>, #tpu.dimension_semantics<arbitrary>], iteration_bounds = array<i64: 4, 1, 1>, scalar_prefetch = 0 : i64, scratch_operands = 5 : i64, tpu.core_type = #tpu.core_type<tc>, window_params = [{}, {}, {transform_indices = @transform_2, window_bounds = array<i64: 1, 128, 128>}, {transform_indices = @transform_3, window_bounds = array<i64: 1, 1, 128>}, {transform_indices = @transform_4, window_bounds = array<i64: 8, 128>}, {pipeline_mode = #tpu.pipeline_mode<synchronous>, transform_indices = @transform_5, window_bounds = array<i64: 128, 128>}, {pipeline_mode = #tpu.pipeline_mode<synchronous>, transform_indices = @transform_6, window_bounds = array<i64: 1, 128>}, {pipeline_mode = #tpu.pipeline_mode<synchronous>, transform_indices = @transform_7, window_bounds = array<i64: 8, 128>}]} {
    %c0_i32 = arith.constant 0 : i32
    %0 = arith.cmpi eq, %arg0, %c0_i32 : i32
    %c0_i32_0 = arith.constant 0 : i32
    %1 = arith.cmpi eq, %arg1, %c0_i32_0 : i32
    %2 = arith.andi %0, %1 : i1
    %c0_i32_1 = arith.constant 0 : i32
    %3 = arith.cmpi eq, %arg2, %c0_i32_1 : i32
    %4 = arith.andi %2, %3 : i1
    %5 = arith.extui %4 : i1 to i32
    %c0_i32_2 = arith.constant 0 : i32
    %6 = arith.cmpi ne, %5, %c0_i32_2 : i32
    scf.if %6 {
      %cst_15 = arith.constant 0.000000e+00 : f32
      %31 = vector.broadcast %cst_15 : f32 to vector<8x128xf32>
      %c0_16 = arith.constant 0 : index
      %c0_17 = arith.constant 0 : index
      %32 = vector.load %arg15[%c0_16, %c0_17] : memref<8x128xf32, #tpu.memory_space<vmem>>, vector<8x128xf32>
      tpu.vector_store %arg15[%c0_16, %c0_17], %31 {strides = array<i32>} : memref<8x128xf32, #tpu.memory_space<vmem>>, vector<8x128xf32>,
      "tpu.region"() ({
        %33 = tpu.sem_alloc : memref<!tpu.dma_semaphore, #tpu.memory_space<semaphore_mem>>
        %c0_i32_18 = arith.constant 0 : i32
        %c0_i32_19 = arith.constant 0 : i32
        %34 = tpu.memref_slice %arg13[%c0_i32_18, %c0_i32_19] : memref<256x128xbf16, #tpu.memory_space<vmem>> -> memref<128x128xbf16, #tpu.memory_space<vmem>>
        tpu.enqueue_dma source(%arg4 : memref<128x128xbf16, #tpu.memory_space<any>>) target(%34 : memref<128x128xbf16, #tpu.memory_space<vmem>>) target_semaphore(%33 : memref<!tpu.dma_semaphore, #tpu.memory_space<semaphore_mem>>)
        %c0_i32_20 = arith.constant 0 : i32
        %c0_i32_21 = arith.constant 0 : i32
        %35 = tpu.memref_slice %arg13[%c0_i32_20, %c0_i32_21] : memref<256x128xbf16, #tpu.memory_space<vmem>> -> memref<128x128xbf16, #tpu.memory_space<vmem>>
        tpu.wait_dma2 semaphore(%33 : memref<!tpu.dma_semaphore, #tpu.memory_space<semaphore_mem>>) src(%arg4 : memref<128x128xbf16, #tpu.memory_space<any>>) dst(%35 : memref<128x128xbf16, #tpu.memory_space<vmem>>)
        tpu.yield
      }) : () -> ()
      "tpu.region"() ({
        %33 = tpu.sem_alloc : memref<!tpu.dma_semaphore, #tpu.memory_space<semaphore_mem>>
        tpu.enqueue_dma source(%arg3 : memref<128x128xbf16, #tpu.memory_space<any>>) target(%arg11 : memref<128x128xbf16, #tpu.memory_space<vmem>>) target_semaphore(%33 : memref<!tpu.dma_semaphore, #tpu.memory_space<semaphore_mem>>)
        tpu.wait_dma2 semaphore(%33 : memref<!tpu.dma_semaphore, #tpu.memory_space<semaphore_mem>>) src(%arg3 : memref<128x128xbf16, #tpu.memory_space<any>>) dst(%arg11 : memref<128x128xbf16, #tpu.memory_space<vmem>>)
        tpu.yield
      }) : () -> ()
    } else {
    }
    %c0_i32_3 = arith.constant 0 : i32
    %7 = arith.cmpi eq, %arg1, %c0_i32_3 : i32
    %8 = arith.extui %7 : i1 to i32
    %c0_i32_4 = arith.constant 0 : i32
    %9 = arith.cmpi ne, %8, %c0_i32_4 : i32
    scf.if %9 {
      %c2_i32 = arith.constant 2 : i32
      %c0_i32_15 = arith.constant 0 : i32
      %31 = arith.cmpi eq, %c2_i32, %c0_i32_15 : i32
      %c1_i32 = arith.constant 1 : i32
      %32 = arith.select %31, %c1_i32, %c2_i32 : i32
      %33 = arith.remsi %arg0, %32 : i32
      %c0_i32_16 = arith.constant 0 : i32
      %34 = arith.cmpi ne, %33, %c0_i32_16 : i32
      %c0_i32_17 = arith.constant 0 : i32
      %35 = arith.cmpi slt, %33, %c0_i32_17 : i32
      %c0_i32_18 = arith.constant 0 : i32
      %36 = arith.cmpi slt, %32, %c0_i32_18 : i32
      %37 = arith.xori %35, %36 : i1
      %38 = arith.andi %37, %34 : i1
      %39 = arith.addi %33, %32 : i32
      %40 = arith.select %38, %39, %33 : i32
      %c128_i32_19 = arith.constant 128 : i32
      %41 = arith.muli %40, %c128_i32_19 : i32
      %c128_i32_20 = arith.constant 128 : i32
      %42 = arith.muli %arg2, %c128_i32_20 : i32
      %43 = arith.addi %41, %42 : i32
      %44 = tpu.assume_multiple %43, 128 : i32
      %45 = arith.index_cast %44 : i32 to index
      %c0_21 = arith.constant 0 : index
      %46 = vector.load %arg13[%45, %c0_21] : memref<256x128xbf16, #tpu.memory_space<vmem>>, vector<128x128xbf16>
      %c0_22 = arith.constant 0 : index
      %c0_23 = arith.constant 0 : index
      %c0_24 = arith.constant 0 : index
      %47 = vector.load %arg5[%c0_22, %c0_23, %c0_24] : memref<1x128x128xbf16, #tpu.memory_space<vmem>>, vector<1x128x128xbf16>
      %48 = vector.shape_cast %47 : vector<1x128x128xbf16> to vector<128x128xbf16>
      %cst_25 = arith.constant dense<0.000000e+00> : vector<128x128xf32>
      %49 = tpu.matmul %46, %48, %cst_25 {dimension_numbers = #tpu.dot_dimension_numbers<[1], [0], [0], [1], [0, 0, 1, 1], [], []>} : vector<128x128xbf16>, vector<128x128xbf16>, vector<128x128xf32> -> vector<128x128xf32>
      %50 = arith.truncf %49 : vector<128x128xf32> to vector<128x128xbf16>
      %c128_i32_26 = arith.constant 128 : i32
      %51 = arith.muli %arg2, %c128_i32_26 : i32
      %52 = tpu.assume_multiple %51, 128 : i32
      %53 = arith.index_cast %52 : i32 to index
      %c0_27 = arith.constant 0 : index
      %54 = vector.load %arg12[%53, %c0_27] : memref<128x128xbf16, #tpu.memory_space<vmem>>, vector<128x128xbf16>
      tpu.vector_store %arg12[%53, %c0_27], %50 {strides = array<i32>} : memref<128x128xbf16, #tpu.memory_space<vmem>>, vector<128x128xbf16>,
    } else {
    }
    %c0_i32_5 = arith.constant 0 : i32
    %10 = arith.cmpi eq, %arg2, %c0_i32_5 : i32
    %11 = arith.extui %10 : i1 to i32
    %c0_i32_6 = arith.constant 0 : i32
    %12 = arith.cmpi ne, %11, %c0_i32_6 : i32
    scf.if %12 {
      %cst_15 = arith.constant 0.000000e+00 : f32
      %31 = vector.broadcast %cst_15 : f32 to vector<128x128xf32>
      %c0_16 = arith.constant 0 : index
      %c0_17 = arith.constant 0 : index
      %32 = vector.load %arg14[%c0_16, %c0_17] : memref<128x128xf32, #tpu.memory_space<vmem>>, vector<128x128xf32>
      tpu.vector_store %arg14[%c0_16, %c0_17], %31 {strides = array<i32>} : memref<128x128xf32, #tpu.memory_space<vmem>>, vector<128x128xf32>,
    } else {
    }
    %c128_i32 = arith.constant 128 : i32
    %13 = arith.muli %arg1, %c128_i32 : i32
    %14 = tpu.assume_multiple %13, 128 : i32
    %c128_i32_7 = arith.constant 128 : i32
    %15 = arith.muli %arg2, %c128_i32_7 : i32
    %16 = tpu.assume_multiple %15, 128 : i32
    %17 = arith.index_cast %14 : i32 to index
    %18 = arith.index_cast %16 : i32 to index
    %19 = vector.load %arg11[%17, %18] : memref<128x128xbf16, #tpu.memory_space<vmem>>, vector<128x128xbf16>
    %c128_i32_8 = arith.constant 128 : i32
    %20 = arith.muli %arg2, %c128_i32_8 : i32
    %21 = tpu.assume_multiple %20, 128 : i32
    %22 = arith.index_cast %21 : i32 to index
    %c0 = arith.constant 0 : index
    %23 = vector.load %arg12[%22, %c0] : memref<128x128xbf16, #tpu.memory_space<vmem>>, vector<128x128xbf16>
    %c0_9 = arith.constant 0 : index
    %c0_10 = arith.constant 0 : index
    %24 = vector.load %arg14[%c0_9, %c0_10] : memref<128x128xf32, #tpu.memory_space<vmem>>, vector<128x128xf32>
    %cst = arith.constant dense<0.000000e+00> : vector<128x128xf32>
    %25 = tpu.matmul %19, %23, %cst {dimension_numbers = #tpu.dot_dimension_numbers<[1], [0], [0], [1], [0, 0, 1, 1], [], []>} : vector<128x128xbf16>, vector<128x128xbf16>, vector<128x128xf32> -> vector<128x128xf32>
    %26 = arith.addf %24, %25 : vector<128x128xf32>
    %c0_11 = arith.constant 0 : index
    %c0_12 = arith.constant 0 : index
    %27 = vector.load %arg14[%c0_11, %c0_12] : memref<128x128xf32, #tpu.memory_space<vmem>>, vector<128x128xf32>
    tpu.vector_store %arg14[%c0_11, %c0_12], %26 {strides = array<i32>} : memref<128x128xf32, #tpu.memory_space<vmem>>, vector<128x128xf32>,
    %c0_i32_13 = arith.constant 0 : i32
    %28 = arith.cmpi eq, %arg2, %c0_i32_13 : i32
    %29 = arith.extui %28 : i1 to i32
    %c0_i32_14 = arith.constant 0 : i32
    %30 = arith.cmpi ne, %29, %c0_i32_14 : i32
    scf.if %30 {
      %c0_15 = arith.constant 0 : index
      %c0_16 = arith.constant 0 : index
      %31 = vector.load %arg14[%c0_15, %c0_16] : memref<128x128xf32, #tpu.memory_space<vmem>>, vector<128x128xf32>
      %c0_17 = arith.constant 0 : index
      %c0_18 = arith.constant 0 : index
      %c0_19 = arith.constant 0 : index
      %32 = vector.load %arg6[%c0_17, %c0_18, %c0_19] : memref<1x1x128xf32, #tpu.memory_space<vmem>>, vector<1x1x128xf32>
      %33 = vector.shape_cast %32 : vector<1x1x128xf32> to vector<1x128xf32>
      %34 = vector.broadcast %33 : vector<1x128xf32> to vector<128x128xf32>
      %35 = arith.addf %31, %34 : vector<128x128xf32>
      %cst_20 = arith.constant 0.000000e+00 : f32
      %36 = vector.broadcast %cst_20 : f32 to vector<128x128xf32>
      %37 = arith.maximumf %35, %36 : vector<128x128xf32>
      %38 = tpu.iota {dimensions = array<i32: 0>} : vector<128x1xi32>
      %c128_i32_21 = arith.constant 128 : i32
      %39 = arith.muli %arg1, %c128_i32_21 : i32
      %40 = vector.broadcast %39 : i32 to vector<128x1xi32>
      %41 = arith.addi %38, %40 : vector<128x1xi32>
      %c16_i32 = arith.constant 16 : i32
      %42 = vector.broadcast %c16_i32 : i32 to vector<128x1xi32>
      %43 = arith.cmpi slt, %41, %42 : vector<128x1xi32>
      %cst_22 = arith.constant 0.000000e+00 : f32
      %44 = vector.shape_cast %43 : vector<128x1xi1> to vector<128x1xi1>
      %45 = vector.broadcast %44 : vector<128x1xi1> to vector<128x128xi1>
      %46 = vector.broadcast %cst_22 : f32 to vector<128x128xf32>
      %47 = arith.select %45, %37, %46 : vector<128x128xi1>, vector<128x128xf32>
      %c1_i32 = arith.constant 1 : i32
      %48 = arith.addi %arg0, %c1_i32 : i32
      %c2_i32 = arith.constant 2 : i32
      %c0_i32_23 = arith.constant 0 : i32
      %49 = arith.cmpi eq, %c2_i32, %c0_i32_23 : i32
      %c1_i32_24 = arith.constant 1 : i32
      %50 = arith.select %49, %c1_i32_24, %c2_i32 : i32
      %51 = arith.remsi %48, %50 : i32
      %c0_i32_25 = arith.constant 0 : i32
      %52 = arith.cmpi ne, %51, %c0_i32_25 : i32
      %c0_i32_26 = arith.constant 0 : i32
      %53 = arith.cmpi slt, %51, %c0_i32_26 : i32
      %c0_i32_27 = arith.constant 0 : i32
      %54 = arith.cmpi slt, %50, %c0_i32_27 : i32
      %55 = arith.xori %53, %54 : i1
      %56 = arith.andi %55, %52 : i1
      %57 = arith.addi %51, %50 : i32
      %58 = arith.select %56, %57, %51 : i32
      %c128_i32_28 = arith.constant 128 : i32
      %59 = arith.muli %58, %c128_i32_28 : i32
      %c128_i32_29 = arith.constant 128 : i32
      %60 = arith.muli %arg1, %c128_i32_29 : i32
      %61 = arith.addi %59, %60 : i32
      %62 = arith.truncf %47 : vector<128x128xf32> to vector<128x128xbf16>
      %63 = tpu.assume_multiple %61, 128 : i32
      %64 = arith.index_cast %63 : i32 to index
      %c0_30 = arith.constant 0 : index
      %65 = vector.load %arg13[%64, %c0_30] : memref<256x128xbf16, #tpu.memory_space<vmem>>, vector<128x128xbf16>
      tpu.vector_store %arg13[%64, %c0_30], %62 {strides = array<i32>} : memref<256x128xbf16, #tpu.memory_space<vmem>>, vector<128x128xbf16>,
      %c3_i32 = arith.constant 3 : i32
      %66 = arith.cmpi eq, %arg0, %c3_i32 : i32
      %67 = arith.extui %66 : i1 to i32
      %c0_i32_31 = arith.constant 0 : i32
      %68 = arith.cmpi ne, %67, %c0_i32_31 : i32
      scf.if %68 {
        %c0_32 = arith.constant 0 : index
        %c0_33 = arith.constant 0 : index
        %69 = vector.load %arg15[%c0_32, %c0_33] : memref<8x128xf32, #tpu.memory_space<vmem>>, vector<8x128xf32>
        %c0_34 = arith.constant 0 : index
        %c0_35 = arith.constant 0 : index
        %70 = vector.load %arg7[%c0_34, %c0_35] : memref<8x128xbf16, #tpu.memory_space<vmem>>, vector<8x128xbf16>
        %71 = arith.truncf %47 : vector<128x128xf32> to vector<128x128xbf16>
        %cst_36 = arith.constant dense<0.000000e+00> : vector<8x128xf32>
        %72 = tpu.matmul %70, %71, %cst_36 {dimension_numbers = #tpu.dot_dimension_numbers<[1], [0], [0], [1], [0, 0, 1, 1], [], []>} : vector<8x128xbf16>, vector<128x128xbf16>, vector<8x128xf32> -> vector<8x128xf32>
        %73 = arith.addf %69, %72 : vector<8x128xf32>
        %c0_37 = arith.constant 0 : index
        %c0_38 = arith.constant 0 : index
        %74 = vector.load %arg15[%c0_37, %c0_38] : memref<8x128xf32, #tpu.memory_space<vmem>>, vector<8x128xf32>
        tpu.vector_store %arg15[%c0_37, %c0_38], %73 {strides = array<i32>} : memref<8x128xf32, #tpu.memory_space<vmem>>, vector<8x128xf32>,
        %c0_i32_39 = arith.constant 0 : i32
        %75 = arith.cmpi eq, %arg1, %c0_i32_39 : i32
        %76 = arith.extui %75 : i1 to i32
        %c0_i32_40 = arith.constant 0 : i32
        %77 = arith.cmpi ne, %76, %c0_i32_40 : i32
        scf.if %77 {
          %c0_41 = arith.constant 0 : index
          %c0_42 = arith.constant 0 : index
          %78 = vector.load %arg15[%c0_41, %c0_42] : memref<8x128xf32, #tpu.memory_space<vmem>>, vector<8x128xf32>
          %c0_43 = arith.constant 0 : index
          %c0_44 = arith.constant 0 : index
          %79 = vector.load %arg8[%c0_43, %c0_44] : memref<128x128xf32, #tpu.memory_space<vmem>>, vector<128x128xf32>
          %cst_45 = arith.constant dense<0.000000e+00> : vector<8x128xf32>
          %80 = tpu.matmul %78, %79, %cst_45 {dimension_numbers = #tpu.dot_dimension_numbers<[1], [0], [0], [1], [0, 0, 1, 1], [], []>} : vector<8x128xf32>, vector<128x128xf32>, vector<8x128xf32> -> vector<8x128xf32>
          %c0_46 = arith.constant 0 : index
          %c0_47 = arith.constant 0 : index
          %81 = vector.load %arg9[%c0_46, %c0_47] : memref<1x128xf32, #tpu.memory_space<vmem>>, vector<1x128xf32>
          %82 = vector.broadcast %81 : vector<1x128xf32> to vector<8x128xf32>
          %83 = arith.addf %80, %82 : vector<8x128xf32>
          %c0_48 = arith.constant 0 : index
          %c0_49 = arith.constant 0 : index
          %84 = vector.load %arg10[%c0_48, %c0_49] : memref<8x128xf32, #tpu.memory_space<vmem>>, vector<8x128xf32>
          tpu.vector_store %arg10[%c0_48, %c0_49], %83 {strides = array<i32>} : memref<8x128xf32, #tpu.memory_space<vmem>>, vector<8x128xf32>,
        } else {
        }
      } else {
      }
    } else {
    }
    return
  }
  func.func @transform_2(%arg0: i32, %arg1: i32, %arg2: i32) -> (i32, i32, i32) {
    %c0_i32 = arith.constant 0 : i32
    %c0_i32_0 = arith.constant 0 : i32
    %c0_i32_1 = arith.constant 0 : i32
    return %arg0, %c0_i32, %c0_i32_0 : i32, i32, i32
  }
  func.func @transform_3(%arg0: i32, %arg1: i32, %arg2: i32) -> (i32, i32, i32) {
    %c0_i32 = arith.constant 0 : i32
    %c0_i32_0 = arith.constant 0 : i32
    %c0_i32_1 = arith.constant 0 : i32
    return %arg0, %c0_i32, %c0_i32_0 : i32, i32, i32
  }
  func.func @transform_4(%arg0: i32, %arg1: i32, %arg2: i32) -> (i32, i32) {
    %c3_i32 = arith.constant 3 : i32
    %0 = arith.cmpi eq, %arg0, %c3_i32 : i32
    %c0_i32 = arith.constant 0 : i32
    %1 = arith.select %0, %arg1, %c0_i32 : i32
    %c0_i32_0 = arith.constant 0 : i32
    %c0_i32_1 = arith.constant 0 : i32
    return %c0_i32_0, %1 : i32, i32
  }
  func.func @transform_5(%arg0: i32, %arg1: i32, %arg2: i32) -> (i32, i32) {
    %c0_i32 = arith.constant 0 : i32
    %c0_i32_0 = arith.constant 0 : i32
    %c0_i32_1 = arith.constant 0 : i32
    return %c0_i32, %c0_i32_0 : i32, i32
  }
  func.func @transform_6(%arg0: i32, %arg1: i32, %arg2: i32) -> (i32, i32) {
    %c0_i32 = arith.constant 0 : i32
    %c0_i32_0 = arith.constant 0 : i32
    %c0_i32_1 = arith.constant 0 : i32
    return %c0_i32, %c0_i32_0 : i32, i32
  }
  func.func @transform_7(%arg0: i32, %arg1: i32, %arg2: i32) -> (i32, i32) {
    %c0_i32 = arith.constant 0 : i32
    %c0_i32_0 = arith.constant 0 : i32
    %c0_i32_1 = arith.constant 0 : i32
    return %c0_i32, %c0_i32_0 : i32, i32
  }
}

</mosaic_0001>

<bundles_post_ra>
// kernel: tpu_custom_call.1
= control target key start
LH: loop header
LB: loop body
LE: loop exit
PB: predicated region body
PF: predicated region fallthrough
CT: control target
= control target key end

     0   :  { %12 = vsyncpa [#allocation8], 0  ;;  %s2439_s0 = inlined_call_operand.hbm [shape: bf16[128,128], index: 0, kind: input, shape index: {}]   ;;  %s2440_s1 = inlined_call_operand.hbm [shape: bf16[128,128], index: 1, kind: input, shape index: {}]   ;;  %s2441_s2 = inlined_call_operand.hbm [shape: bf16[4,128,128], index: 2, kind: input, shape index: {}]   ;;  %s2442_s3 = inlined_call_operand.vmem [shape: f32[4,1,128], index: 3, kind: input, shape index: {}]   ;;  %s2443_s4 = inlined_call_operand.hbm [shape: bf16[8,128], index: 4, kind: input, shape index: {}]   ;;  %s2444_s5 = inlined_call_operand.hbm [shape: f32[128,128], index: 5, kind: input, shape index: {}]   ;;  %s2445_s6 = inlined_call_operand.vmem [shape: f32[1,128], index: 6, kind: input, shape index: {}]   ;;  %s2446_s7 = inlined_call_operand.hbm [shape: f32[8,128], index: 7, kind: output, shape index: {}]  }
   0x1   :  { %14 = vsyncpa [#allocation8 + $0x1], 0 }
   0x2   :  { %15 = vsyncpa [#allocation11], 0 }
   0x3   :  { %17 = vsyncpa [#allocation11 + $0x1], 0 }
   0x4   :  { %18 = vsyncpa [#allocation9], 0  ;;  %s2239_s24 = smov 0   ;;  %s2241_s25 = smov 0  }
   0x5   :  { %s2243_s26 = smov 0   ;;  %s2245_s27 = smov 0  }
   0x6   :  { %s2247_s28 = smov 0   ;;  %s2249_s29 = smov 0  }
   0x7 LB: > { %s2268_s30 = sadd.s32 4294967295, %s2183_s29   ;;  %p63_p0 = scmp.ne.s32.totalorder %s2167_s25, %s2163_s24  ;;  %s2183_s29 = sphi %s2249_s29, %s24_s29   ;;  %s2179_s28 = sphi %s2247_s28, %s2455_s28   ;;  %s2175_s27 = sphi %s2245_s27, %s2454_s27   ;;  %s2171_s26 = sphi %s2243_s26, %s2453_s26   ;;  %s2167_s25 = sphi %s2241_s25, %s2452_s25   ;;  %s2163_s24 = sphi %s2239_s24, %s2451_s24  }
   0x8   : > { %p64_p1 = scmp.eq.s32.totalorder %s2268_s30, 0  ;;  %p1525_p2 = scmp.ge.s32.totalorder %s2183_s29, 1 }
   0x9   : > { %p193_p3 = scmp.lt.s32.totalorder %s2183_s29, 5  ;;  %s2185_s10 = smov [#allocation12]  }
   0xa   : > { %p2276_p4 = por %p64_p1, %p63_p0  ;;  %s205_s11 = sshll.u32 %s2185_s10, 4  ;;  %s206_s11 = int_to_ptr.vmem [resolvable:$true] %s205_s11 }
   0xb   : > { %p2280_p5 = pnand %p1525_p2, %p193_p3  ;;  %s1984_s12 = scalar_lea.vmem %s206_s11, 2048 }
   0xc   : > { %p1985_p9 = scmp.ne.s32.totalorder %s206_s11, %s1984_s12  ;;  %p1992_p12 = scmp.lt.s32.totalorder %s206_s11, %s206_s11 }
   0xd   : > { %p1862_p6 = pneg %p2280_p5  ;;  %p1993_p13 = scmp.lt.s32.totalorder %s1984_s12, %s1984_s12 }
   0xf   : > { %p1863_p7 = pnand %p1862_p6, %p64_p1  ;;  %p1994_p0 = por %p1993_p13, %p1992_p12 }
  0x11   : > { %p1975_p8 = pneg %p1863_p7 }
  0x13   : > { %p1987_p10 = pnand %p1985_p9, %p1975_p8 }
  0x15   : > { %p1988_p11 = pneg %p1987_p10 }
  0x17   : > { %p1995_p2 = pnand %p1994_p0, %p1988_p11 }
  0x19   : > { %1998 = shalt.err (!%p1995_p2)
}
  0x1a   : > { %s2186_s13 = smov 128   ;;  %s2187_s14 = smov 8  }
  0x1b   : > { %1865 = dma.hbm_to_vmem [thread:$0]  (!%p1863_p7), %s2444_s5, 2048, %s206_s11, [#allocation11], %s2186_s13, %s2186_s13, %s2187_s14  }
  0x1c   : > { %s43_s17 = sadd.s32 1, %s2179_s28  ;;  %s50_s18 = sadd.s32 1, %s2171_s26 }
  0x1d   : > { %p45_p3 = scmp.ge.s32.totalorder %s43_s17, 4  ;;  %p57_p6 = scmp.ne.s32.totalorder %s2171_s26, %s2167_s25 }
  0x1e   : > { %p58_p8 = scmp.eq.s32.totalorder %s2183_s29, 0  ;;  %p1874_p9 = scmp.lt.s32.totalorder %s2183_s29, 4 }
  0x1f   : > { %s2457_s17 = smov (%p45_p3, %s43_s17), 0  ;;  %s222_s19 = sand.u32 1, %s2171_s26  }
  0x20   : > { %p59_p10 = por %p58_p8, %p57_p6  ;;  %s47_s20 = ssub.s32 %s2179_s28, %s2457_s17 }
  0x21   : > { %p48_p11 = scmp.eq.s32.totalorder %s47_s20, 0  ;;  %s1528_s21 = sshll.u32 %s222_s19, 6 }
  0x22   : > { %s1619_s22 = sshll.u32 %s2179_s28, 10  ;;  %s226_s12 = scalar_lea.vmem [#allocation7], %s1528_s21 }
  0x23   : > { %s2306_s23 = scalar_select %p48_p11, %s2171_s26, %s50_s18  }
  0x24   : > { %s232_s11 = scalar_lea.hbm %s2441_s2, %s1619_s22  ;;  %s233_s13 = sshll.u32 %s226_s12, 4  ;;  %s234_s13 = int_to_ptr.vmem [resolvable:$true] %s233_s13 }
  0x25   : > { %p2313_p7 = pnand %p1874_p9, %p59_p10  ;;  %s249_s15 = sand.u32 1, %s2183_s29  }
  0x26   : > { %s223_s16 = scalar_lea.sflag [#allocation8], %s222_s19  ;;  %s2012_s20 = scalar_lea.vmem %s234_s13, 1024 }
  0x27   : > { %p2001_p12 = pneg %p2313_p7  ;;  %p2013_p13 = scmp.ne.s32.totalorder %s234_s13, %s2012_s20 }
  0x28   : > { %s2188_s18 = smov [#allocation7]  }
  0x29   : > { %p2015_p0 = pnand %p2013_p13, %p2001_p12  ;;  %s2017_s24 = sshll.u32 %s2188_s18, 4  ;;  %s2018_s24 = int_to_ptr.vmem [resolvable:$false] %s2017_s24 }
  0x2a   : > { %s2019_s21 = scalar_lea.vmem %s2018_s24, 2048  ;;  %p2020_p3 = scmp.lt.s32.totalorder %s234_s13, %s2018_s24 }
  0x2b   : > { %p2016_p2 = pneg %p2015_p0  ;;  %p2021_p6 = scmp.lt.s32.totalorder %s2019_s21, %s2012_s20 }
  0x2d   : > { %p2022_p11 = por %p2021_p6, %p2020_p3 }
  0x2f   : > { %p2023_p10 = pnand %p2022_p11, %p2016_p2 }
  0x31   : > { %2026 = shalt.err (!%p2023_p10)
}
  0x32   : > { %s2189_s22 = smov 64   ;;  %s2190_s19 = smov 4  }
  0x33   : > { %1869 = dma.hbm_to_vmem [thread:$0]  (!%p2313_p7), %s232_s11, 1024, %s234_s13, %s223_s16, %s2189_s22, %s2189_s22, %s2190_s19  }
  0x34   : > { %s2191_s10 = smov [#allocation10]   ;;  %p2326_p12 = pnand %p1874_p9, %p58_p8 }
  0x35   : > { %s262_s12 = sshll.u32 %s2191_s10, 4  ;;  %s250_s20 = scalar_lea.sflag [#allocation11], %s249_s15  ;;  %s263_s12 = int_to_ptr.vmem [resolvable:$true] %s262_s12 }
  0x36   : > { %p2029_p13 = pneg %p2326_p12  ;;  %s2038_s24 = scalar_lea.vmem %s263_s12, 64 }
  0x37   : > { %p2039_p0 = scmp.ne.s32.totalorder %s263_s12, %s2038_s24  ;;  %s2045_s21 = scalar_lea.vmem %s263_s12, 128 }
  0x38   : > { %p2046_p6 = scmp.lt.s32.totalorder %s263_s12, %s263_s12  ;;  %p2047_p7 = scmp.lt.s32.totalorder %s2045_s21, %s2038_s24 }
  0x39   : > { %p2041_p2 = pnand %p2039_p0, %p2029_p13 }
  0x3a   : > { %p2048_p11 = por %p2047_p7, %p2046_p6 }
  0x3b   : > { %p2042_p3 = pneg %p2041_p2 }
  0x3d   : > { %p2049_p10 = pnand %p2048_p11, %p2042_p3 }
  0x3f   : > { %2052 = shalt.err (!%p2049_p10)
}
  0x40   : > { %1872 = dma.hbm_to_vmem [thread:$0]  (!%p2326_p12), %s2443_s4, 64, %s263_s12, %s250_s20  }
  0x41   : > { %271 = sbr.rel (%p2280_p5) target bundleno = 1041 (0x411), region = 40  ;;  %s273_s14 = sand.u32 (!%p2280_p5), 1, %s2167_s25  }
  0x42   : > { %s1533_s15 = sshll.u32 (!%p2280_p5), %s273_s14, 6  ;;  %s274_s16 = scalar_lea.sflag (!%p2280_p5), [#allocation8], %s273_s14 }
  0x43   : > { %s2340_s22 = scalar_lea.vmem (!%p2280_p5), [#allocation7], %s1533_s15 }
  0x46   : > { %2142 = dma.done.wait (%p2276_p4), %s274_s16, 1024  }
  0x47   : > { %2144 = vsyncadd (%p2276_p4), %s274_s16, 4294966272  ;;  %s282_s19 = sand.u32 1, %s2268_s30  }
  0x48   : > { %s283_s10 = scalar_lea.sflag [#allocation11], %s282_s19 }
  0x49   : > { %2146 = dma.done.wait (%p64_p1), %s283_s10, 64  }
  0x4a   : > { %2148 = vsyncadd (%p64_p1), %s283_s10, 4294967232 }
  0x4b   : > { %2150 = dma.done.wait (%p64_p1), [#allocation11], 2048  }
  0x4c   : > { %2152 = vsyncadd (%p64_p1), [#allocation11], 4294965248  ;;  %p320_p5 = scmp.lt.s32.totalorder %s2175_s27, 3  ;;  %p326_p4 = scmp.eq.s32.totalorder %s2175_s27, 0 }
  0x4d   : > { %v2192_v0 = vmov (%p326_p4), 0.0  }
  0x4e   : > { %s2358_s8 = scalar_select %p320_p5, %s2175_s27, 3  ;;  %335 = vst [vmem:[#allocation6] sm:$0xff] (%p326_p4), %v2192_v0 }
  0x4f   : > { %334 = sbr.rel (!%p326_p4) target bundleno = 111 (0x6f), region = 56 }
  0x50   : > { %s322_s18 = scalar_lea.vmem %s2442_s3, %s2358_s8 }
  0x54   : > { %s2193_s20 = smov [#allocation4]  }
  0x55   : > { %s343_s24 = sshll.u32 %s2193_s20, 4  ;;  %s344_s24 = int_to_ptr.vmem [resolvable:$true] %s343_s24 }
  0x56   : > { %s2061_s21 = scalar_lea.vmem %s344_s24, 1024  ;;  %s2065_s11 = scalar_lea.vmem %s344_s24, 2048 }
  0x57   : > { %p2062_p1 = scmp.ne.s32.totalorder %s344_s24, %s2061_s21  ;;  %p2066_p8 = scmp.lt.s32.totalorder %s344_s24, %s344_s24 }
  0x58   : > { %p2067_p9 = scmp.lt.s32.totalorder %s2065_s11, %s2061_s21 }
  0x5a   : > { %p2068_p12 = por %p2067_p9, %p2066_p8 }
  0x5c   : > { %p2069_p13 = pnand %p2068_p12, %p2062_p1 }
  0x5e   : > { %2072 = shalt.err (!%p2069_p13)  }
  0x5f   : > { %346 = dma.hbm_to_vmem [thread:$0]  %s2440_s1, 1024, %s344_s24, [#allocation14] }
  0x60   : > { %2153 = dma.done.wait [#allocation14], 1024 }
  0x61   : > { %2154 = vsyncadd [#allocation14], 4294966272 }
  0x62   : > { %s2194_s15 = smov [#allocation2]  }
  0x63   : > { %s358_s16 = sshll.u32 %s2194_s15, 4  ;;  %s359_s16 = int_to_ptr.vmem [resolvable:$true] %s358_s16 }
  0x64   : > { %s2081_s19 = scalar_lea.vmem %s359_s16, 1024  ;;  %p2086_p2 = scmp.lt.s32.totalorder %s359_s16, %s359_s16 }
  0x65   : > { %p2082_p0 = scmp.ne.s32.totalorder %s359_s16, %s2081_s19  ;;  %p2087_p3 = scmp.lt.s32.totalorder %s2081_s19, %s2081_s19 }
  0x67   : > { %p2088_p6 = por %p2087_p3, %p2086_p2 }
  0x69   : > { %p2089_p7 = pnand %p2088_p6, %p2082_p0 }
  0x6b   : > { %2092 = shalt.err (!%p2089_p7)  }
  0x6c   : > { %361 = dma.hbm_to_vmem [thread:$0]  %s2439_s0, 1024, %s359_s16, [#allocation19] }
  0x6d   : > { %2155 = dma.done.wait [#allocation19], 1024 }
  0x6e   : > { %2156 = vsyncadd [#allocation19], 4294966272 }
  0x6f PF: > { %v1941_v1 = vld [vmem:[%s2340_s22 + $0x38] sm:$0xff]   ;;  %p369_p11 = scmp.lt.s32.totalorder %s2175_s27, 0  ;;  %v1942_v2 = vld [vmem:[%s2340_s22 + $0x30] sm:$0xff]   ;;  %s370_s12 = ssub.s32 0, %s2175_s27  ;;  %v1943_v3 = vld [vmem:[%s2340_s22 + $0x28] sm:$0xff]   ;;  %v2195_v9 = vmov 0.0|0.0  }
  0x70   : > { %1743 = vmatprep.subr.bf16.mxu0 %v1941_v1  ;;  %s1538_s20 = smin.u32 %s2175_s27, %s370_s12  ;;  %s1158_s11 = sadd.s32 1, %s2175_s27  ;;  %v1944_v4 = vld [vmem:[%s2340_s22 + $0x20] sm:$0xff]   ;;  %v1945_v5 = vld [vmem:[%s2340_s22 + $0x18] sm:$0xff]   ;;  %v1946_v7 = vld [vmem:[%s2340_s22 + $0x10] sm:$0xff]   ;;  %v1598_v10 = vcombine.low %v2195_v9, %v2195_v9  ;;  %v1599_v11 = vcombine.high %v2195_v9, %v2195_v9 }
  0x71   : > { %1744 = vmatpush3.bf16.msra.mxu0 %v1941_v1  ;;  %s372_s24 = sand.u32 1, %s1538_s20   ;;  %p1159_p5 = scmp.lt.s32.totalorder %s1158_s11, 0  ;;  %v1947_v8 = vld [vmem:[%s2340_s22 + $0x8] sm:$0xff]   ;;  %v1948_v12 = vld [vmem:[%s2340_s22] sm:$0xff]   ;;  %v1965_v20 = vld [vmem:[#allocation2] sm:$0xff]  }
  0x72   : > { %1745 = vmatprep.subr.bf16.mxu0 %v1942_v2  ;;  %s373_s21 = ssub.s32 0, %s372_s24  ;;  %s1160_s14 = ssub.s32 0, %s1158_s11  ;;  %1791 = vmatprep.mubr.bf16.mxu1 %v1965_v20  ;;  %v1966_v53 = vld [vmem:[#allocation2 + $0x8] sm:$0xff]   ;;  %v1967_v54 = vld [vmem:[#allocation2 + $0x10] sm:$0xff]   ;;  %v1968_v55 = vld [vmem:[#allocation2 + $0x18] sm:$0xff]  }
  0x73   : > { %s2459_s21 = smov (!%p369_p11, %s373_s21), %s372_s24  ;;  %s1592_s15 = smin.u32 %s1160_s14, %s1158_s11  ;;  %v1969_v56 = vld [vmem:[#allocation2 + $0x20] sm:$0xff]   ;;  %v1970_v57 = vld [vmem:[#allocation2 + $0x28] sm:$0xff]   ;;  %v1971_v58 = vld [vmem:[#allocation2 + $0x30] sm:$0xff]  }
  0x74   : > { %p1540_p10 = scmp.lt.s32.totalorder %s2459_s21, 0  ;;  %s379_s13 = sadd.s32 2, %s2459_s21  ;;  %v1972_v59 = vld [vmem:[#allocation2 + $0x38] sm:$0xff]   ;;  %v1591_v62 = vld [vmem:[%s322_s18] ss:$0 sm:$0xff] }
  0x75   : > { %1746 = vmatpush3.bf16.msra.mxu0 %v1942_v2  ;;  %s1162_s19 = sand.u32 1, %s1592_s15   ;;  %p1613_p1 = scmp.ne.s32.totalorder %s2175_s27, 3 }
  0x76   : > { %1747 = vmatprep.subr.bf16.mxu0 %v1943_v3  ;;  %s2461_s13 = smov (!%p1540_p10, %s379_s13), %s2459_s21  ;;  %s1163_s9 = ssub.s32 0, %s1162_s19 }
  0x77   : > { %s1541_s16 = sshll.u32 %s2461_s13, 7  ;;  %s2463_s9 = smov (!%p1159_p5, %s1163_s9), %s1162_s19 }
  0x78   : > { %s384_s10 = sshra.s32 %s1541_s16, 3  ;;  %p1594_p4 = scmp.lt.s32.totalorder %s2463_s9, 0 }
  0x79   : > { %1748 = vmatpush3.bf16.msra.mxu0 %v1943_v3  ;;  %s1542_s12 = sshll.u32 %s384_s10, 2  ;;  %s1169_s24 = sadd.s32 2, %s2463_s9 }
  0x7a   : > { %1749 = vmatprep.subr.bf16.mxu0 %v1944_v4  ;;  %s387_s20 = scalar_lea.vmem [#allocation4], %s1542_s12  ;;  %s2465_s24 = smov (!%p1594_p4, %s1169_s24), %s2463_s9 }
  0x7b   : > { %v1949_v6 = vld [vmem:[%s387_s20] sm:$0xff]   ;;  %s1595_s21 = sshll.u32 %s2465_s24, 7  ;;  %v1950_v13 = vld [vmem:[%s387_s20 + $0x8] sm:$0xff]   ;;  %v1951_v14 = vld [vmem:[%s387_s20 + $0x10] sm:$0xff]  }
  0x7c   : > { %1759 = vmatprep.mubr.bf16.mxu0 %v1949_v6  ;;  %s1237_s13 = sshra.s32 %s1595_s21, 3  ;;  %v1952_v15 = vld [vmem:[%s387_s20 + $0x18] sm:$0xff]   ;;  %v1953_v16 = vld [vmem:[%s387_s20 + $0x20] sm:$0xff]   ;;  %v1954_v17 = vld [vmem:[%s387_s20 + $0x28] sm:$0xff]  }
  0x7d   : > { %1750 = vmatpush3.bf16.msra.mxu0 %v1944_v4  ;;  %s1612_s14 = sshll.u32 %s1237_s13, 2  ;;  %v1955_v18 = vld [vmem:[%s387_s20 + $0x30] sm:$0xff]   ;;  %v1956_v19 = vld [vmem:[%s387_s20 + $0x38] sm:$0xff]  }
  0x7e   : > { %1751 = vmatprep.subr.bf16.mxu0 %v1945_v5  ;;  %s2383_s11 = scalar_lea.vmem [#allocation4], %s1612_s14 }
  0x7f   : > { %1243 = vst [vmem:[%s2383_s11 + $0x8] sm:$0xf] %v1598_v10  ;;  %1244 = vst [vmem:[%s2383_s11 + $0xc] sm:$0xf] %v1599_v11 }
  0x80   : > { %1245 = vst [vmem:[%s2383_s11 + $0x10] sm:$0xf] %v1598_v10  ;;  %1246 = vst [vmem:[%s2383_s11 + $0x14] sm:$0xf] %v1599_v11 }
  0x81   : > { %1752 = vmatpush3.bf16.msra.mxu0 %v1945_v5  ;;  %1247 = vst [vmem:[%s2383_s11 + $0x18] sm:$0xf] %v1598_v10  ;;  %1248 = vst [vmem:[%s2383_s11 + $0x1c] sm:$0xf] %v1599_v11 }
  0x82   : > { %1753 = vmatprep.subr.bf16.mxu0 %v1946_v7  ;;  %1249 = vst [vmem:[%s2383_s11 + $0x20] sm:$0xf] %v1598_v10  ;;  %1250 = vst [vmem:[%s2383_s11 + $0x24] sm:$0xf] %v1599_v11 }
  0x83   : > { %1251 = vst [vmem:[%s2383_s11 + $0x28] sm:$0xf] %v1598_v10  ;;  %1252 = vst [vmem:[%s2383_s11 + $0x2c] sm:$0xf] %v1599_v11 }
  0x84   : > { %1253 = vst [vmem:[%s2383_s11 + $0x30] sm:$0xf] %v1598_v10  ;;  %1254 = vst [vmem:[%s2383_s11 + $0x34] sm:$0xf] %v1599_v11 }
  0x85   : > { %1754 = vmatpush3.bf16.msra.mxu0 %v1946_v7  ;;  %1255 = vst [vmem:[%s2383_s11 + $0x38] sm:$0xf] %v1598_v10  ;;  %1256 = vst [vmem:[%s2383_s11 + $0x3c] sm:$0xf] %v1599_v11 }
  0x86   : > { %1755 = vmatprep.subr.bf16.mxu0 %v1947_v8 }
  0x89   : > { %1756 = vmatpush3.bf16.msra.mxu0 %v1947_v8 }
  0x8a   : > { %1757 = vmatprep.subr.bf16.mxu0 %v1948_v12 }
  0x8d   : > { %1758 = vmatpush3.bf16.msra.mxu0 %v1948_v12 }
  0x90   : > { %1760 = vmatmul.mubr.bf16.vlgmr.msra.gmra.mxu0 %v1950_v13 }
  0x91   : > { %1763 = vmatprep.mubr.bf16.mxu0 %v1951_v14 }
  0x98   : > { %1764 = vmatmul.mubr.bf16.gmra.mxu0 %v1952_v15 }
  0x99   : > { %1767 = vmatprep.mubr.bf16.mxu0 %v1953_v16 }
  0xa0   : > { %1768 = vmatmul.mubr.bf16.gmra.mxu0 %v1954_v17 }
  0xa1   : > { %1771 = vmatprep.mubr.bf16.mxu0 %v1955_v18 }
  0xa8   : > { %1772 = vmatmul.mubr.bf16.gmra.mxu0 %v1956_v19 }
 0x150   : > { %v1761_v21 = vpop.f32.mrf.mxu0 }
 0x152   : > { %v550_v22 = vpop.f32.mrf.mxu0 }
 0x154   : > { %v1762_v23 = vpop.f32.mrf.mxu0 }
 0x155   : > { %v1648_v24 = vpack.c.bf16 %v1762_v23, %v1761_v21 }
 0x156   : > { %v553_v25 = vpop.f32.mrf.mxu0 }
 0x157   : > { %1685 = vst [vmem:[#allocation3 + $0x8] sm:$0xff] %v1648_v24   ;;  %v1643_v26 = vpack.c.bf16 %v553_v25, %v550_v22 }
 0x158   : > { %v1765_v27 = vpop.f32.mrf.mxu0 }
 0x159   : > { %1644 = vst [vmem:[#allocation3] sm:$0xff] %v1643_v26  }
 0x15a   : > { %v566_v28 = vpop.f32.mrf.mxu0 }
 0x15c   : > { %v1766_v29 = vpop.f32.mrf.mxu0 }
 0x15d   : > { %v1658_v30 = vpack.c.bf16 %v1766_v29, %v1765_v27 }
 0x15e   : > { %v569_v31 = vpop.f32.mrf.mxu0  ;;  %v1963_v51 = vld [vmem:[#allocation3 + $0x8] sm:$0xff]  }
 0x15f   : > { %1687 = vst [vmem:[#allocation3 + $0x18] sm:$0xff] %v1658_v30   ;;  %v1653_v32 = vpack.c.bf16 %v569_v31, %v566_v28 }
 0x160   : > { %v1769_v33 = vpop.f32.mrf.mxu0  ;;  %v1964_v52 = vld [vmem:[#allocation3] sm:$0xff]  }
 0x161   : > { %1686 = vst [vmem:[#allocation3 + $0x10] sm:$0xff] %v1653_v32  }
 0x162   : > { %v582_v34 = vpop.f32.mrf.mxu0 }
 0x164   : > { %v1770_v35 = vpop.f32.mrf.mxu0 }
 0x165   : > { %v1668_v36 = vpack.c.bf16 %v1770_v35, %v1769_v33 }
 0x166   : > { %v585_v37 = vpop.f32.mrf.mxu0  ;;  %v1961_v49 = vld [vmem:[#allocation3 + $0x18] sm:$0xff]  }
 0x167   : > { %1689 = vst [vmem:[#allocation3 + $0x28] sm:$0xff] %v1668_v36   ;;  %v1663_v38 = vpack.c.bf16 %v585_v37, %v582_v34 }
 0x168   : > { %v1773_v39 = vpop.f32.mrf.mxu0  ;;  %v1962_v50 = vld [vmem:[#allocation3 + $0x10] sm:$0xff]  }
 0x169   : > { %1688 = vst [vmem:[#allocation3 + $0x20] sm:$0xff] %v1663_v38  }
 0x16a   : > { %v598_v40 = vpop.f32.mrf.mxu0 }
 0x16c   : > { %v1774_v41 = vpop.f32.mrf.mxu0 }
 0x16d   : > { %v1678_v42 = vpack.c.bf16 %v1774_v41, %v1773_v39 }
 0x16e   : > { %v601_v43 = vpop.f32.mrf.mxu0  ;;  %v1959_v47 = vld [vmem:[#allocation3 + $0x28] sm:$0xff]  }
 0x16f   : > { %1691 = vst [vmem:[#allocation3 + $0x38] sm:$0xff] %v1678_v42   ;;  %v1673_v44 = vpack.c.bf16 %v601_v43, %v598_v40 }
 0x170   : > { %v1960_v48 = vld [vmem:[#allocation3 + $0x20] sm:$0xff]  }
 0x171   : > { %1690 = vst [vmem:[#allocation3 + $0x30] sm:$0xff] %v1673_v44  }
 0x176   : > { %v1957_v45 = vld [vmem:[#allocation3 + $0x38] sm:$0xff]  }
 0x177   : > { %1775 = vmatprep.subr.bf16.mxu1 %v1957_v45 }
 0x178   : > { %v1958_v46 = vld [vmem:[#allocation3 + $0x30] sm:$0xff]   ;;  %1776 = vmatpush3.bf16.msra.mxu1 %v1957_v45 }
 0x179   : > { %1777 = vmatprep.subr.bf16.mxu1 %v1958_v46 }
 0x17c   : > { %1778 = vmatpush3.bf16.msra.mxu1 %v1958_v46 }
 0x17d   : > { %1779 = vmatprep.subr.bf16.mxu1 %v1959_v47 }
 0x180   : > { %1780 = vmatpush3.bf16.msra.mxu1 %v1959_v47 }
 0x181   : > { %1781 = vmatprep.subr.bf16.mxu1 %v1960_v48 }
 0x184   : > { %1782 = vmatpush3.bf16.msra.mxu1 %v1960_v48 }
 0x185   : > { %1783 = vmatprep.subr.bf16.mxu1 %v1961_v49 }
 0x188   : > { %1784 = vmatpush3.bf16.msra.mxu1 %v1961_v49 }
 0x189   : > { %1785 = vmatprep.subr.bf16.mxu1 %v1962_v50 }
 0x18c   : > { %1786 = vmatpush3.bf16.msra.mxu1 %v1962_v50 }
 0x18d   : > { %1787 = vmatprep.subr.bf16.mxu1 %v1963_v51 }
 0x190   : > { %1788 = vmatpush3.bf16.msra.mxu1 %v1963_v51 }
 0x191   : > { %1789 = vmatprep.subr.bf16.mxu1 %v1964_v52 }
 0x194   : > { %1790 = vmatpush3.bf16.msra.mxu1 %v1964_v52 }
 0x197   : > { %1792 = vmatmul.mubr.bf16.vlgmr.msra.gmra.mxu1 %v1966_v53 }
 0x198   : > { %1795 = vmatprep.mubr.bf16.mxu1 %v1967_v54 }
 0x19f   : > { %1796 = vmatmul.mubr.bf16.gmra.mxu1 %v1968_v55 }
 0x1a0   : > { %1799 = vmatprep.mubr.bf16.mxu1 %v1969_v56 }
 0x1a7   : > { %1800 = vmatmul.mubr.bf16.gmra.mxu1 %v1970_v57 }
 0x1a8   : > { %1803 = vmatprep.mubr.bf16.mxu1 %v1971_v58 }
 0x1af   : > { %1804 = vmatmul.mubr.bf16.gmra.mxu1 %v1972_v59 }
 0x257   : > { %v1793_v60 = vpop.f32.mrf.mxu1 }
 0x259   : > { %v907_v61 = vpop.f32.mrf.mxu1 }
 0x25a   : > { %v1028_v0 = vadd.f32 %v1591_v62, %v907_v61 }
 0x25b   : > { %v1794_v63 = vpop.f32.mrf.mxu1 }
 0x25c   : > { %v1044_v4 = vmax.f32 %v1028_v0, 0.0 }
 0x25d   : > { %v910_v1 = vpop.f32.mrf.mxu1 }
 0x25e   : > { %v1029_v2 = vadd.f32 %v1591_v62, %v910_v1 }
 0x25f   : > { %v1797_v3 = vpop.f32.mrf.mxu1 }
 0x260   : > { %v1045_v5 = vmax.f32 %v1029_v2, 0.0 }
 0x261   : > { %v923_v6 = vpop.f32.mrf.mxu1 }
 0x262   : > { %v1173_v7 = vpack.c.bf16 %v1045_v5, %v1044_v4 }
 0x263   : > { %v1798_v8 = vpop.f32.mrf.mxu1 }
 0x264   : > { %1684 = vst [vmem:[%s2383_s11] sm:$0xff] %v1173_v7  }
 0x265   : > { %v926_v9 = vpop.f32.mrf.mxu1 }
 0x267   : > { %v1801_v10 = vpop.f32.mrf.mxu1 }
 0x269   : > { %v939_v11 = vpop.f32.mrf.mxu1 }
 0x26b   : > { %v1802_v12 = vpop.f32.mrf.mxu1 }
 0x26d   : > { %v942_v13 = vpop.f32.mrf.mxu1 }
 0x26f   : > { %v1805_v14 = vpop.f32.mrf.mxu1 }
 0x271   : > { %v955_v15 = vpop.f32.mrf.mxu1  ;;  %1260 = sbr.rel (%p1613_p1) target bundleno = 1026 (0x402), region = 82 }
 0x273   : > { %v1806_v16 = vpop.f32.mrf.mxu1 }
 0x275   : > { %v958_v17 = vpop.f32.mrf.mxu1 }
 0x276   : > { %v1324_v18 = vld [vmem:[#allocation12 + $0x78] sm:$0xff]  ;;  %v2196_v19 = vmov 0.0   ;;  %vm2197_vm0 = vmmov 0   ;;  %v1323_v21 = vld [vmem:[#allocation12 + $0x70] sm:$0xff]  ;;  %v1322_v22 = vld [vmem:[#allocation12 + $0x68] sm:$0xff] }
 0x277   : > { %1807 = vmatprep.subr.bf16.mxu0 %v2196_v19  ;;  %1809 = vmatprep.mubr.msk.bf16.mxu0 %vm2197_vm0, %v2196_v19  ;;  %v1262_v20 = vld [vmem:[#allocation10] sm:$0xf]  ;;  %v1321_v23 = vld [vmem:[#allocation12 + $0x60] sm:$0xff]  ;;  %v1319_v25 = vld [vmem:[#allocation12 + $0x50] sm:$0xff] }
 0x278   : > { %1808 = vmatpush3.bf16.msra.mxu0 %v1173_v7  ;;  %1813 = vmatprep.subr.mxu1 %v2196_v19  ;;  %v1320_v24 = vld [vmem:[#allocation12 + $0x58] sm:$0xff]  ;;  %v1318_v26 = vld [vmem:[#allocation12 + $0x48] sm:$0xff]  ;;  %v1317_v27 = vld [vmem:[#allocation12 + $0x40] sm:$0xff] }
 0x279   : > { %1814 = vmatpush3.msra.mxu1 %v1324_v18  ;;  %1845 = vmatprep.mubr.msk.f32.mxu1 %vm2197_vm0, %v2196_v19  ;;  %v1316_v28 = vld [vmem:[#allocation12 + $0x38] sm:$0xff]  ;;  %v1315_v29 = vld [vmem:[#allocation12 + $0x30] sm:$0xff]  ;;  %v1314_v30 = vld [vmem:[#allocation12 + $0x28] sm:$0xff] }
 0x27a   : > { %1815 = vmatprep.subr.mxu1 %v2196_v19  ;;  %v1313_v31 = vld [vmem:[#allocation12 + $0x20] sm:$0xff]  ;;  %v1312_v32 = vld [vmem:[#allocation12 + $0x18] sm:$0xff]  ;;  %v1311_v33 = vld [vmem:[#allocation12 + $0x10] sm:$0xff] }
 0x27b   : > { %1810 = vmatmul.mubr.bf16.vlgmr.msra.gmra.mxu0 %v1262_v20  ;;  %1816 = vmatpush3.msra.mxu1 %v1323_v21  ;;  %v1310_v34 = vld [vmem:[#allocation12 + $0x8] sm:$0xff]  ;;  %v1309_v35 = vld [vmem:[#allocation12] sm:$0xff]  ;;  %v1261_v36 = vld [vmem:[#allocation6] sm:$0xff] }
 0x27c   : > { %1817 = vmatprep.subr.mxu1 %v2196_v19  ;;  %v1614_v42 = vld [vmem:[%s2445_s6] ss:$0 sm:$0xff] }
 0x27d   : > { %1818 = vmatpush3.msra.mxu1 %v1322_v22 }
 0x27e   : > { %1819 = vmatprep.subr.mxu1 %v2196_v19 }
 0x27f   : > { %1820 = vmatpush3.msra.mxu1 %v1321_v23 }
 0x280   : > { %1821 = vmatprep.subr.mxu1 %v2196_v19 }
 0x281   : > { %1822 = vmatpush3.msra.mxu1 %v1320_v24 }
 0x282   : > { %1823 = vmatprep.subr.mxu1 %v2196_v19 }
 0x283   : > { %1824 = vmatpush3.msra.mxu1 %v1319_v25 }
 0x284   : > { %1825 = vmatprep.subr.mxu1 %v2196_v19 }
 0x285   : > { %1826 = vmatpush3.msra.mxu1 %v1318_v26 }
 0x286   : > { %1827 = vmatprep.subr.mxu1 %v2196_v19 }
 0x287   : > { %1828 = vmatpush3.msra.mxu1 %v1317_v27 }
 0x288   : > { %1829 = vmatprep.subr.mxu1 %v2196_v19 }
 0x289   : > { %1830 = vmatpush3.msra.mxu1 %v1316_v28 }
 0x28a   : > { %1831 = vmatprep.subr.mxu1 %v2196_v19 }
 0x28b   : > { %1832 = vmatpush3.msra.mxu1 %v1315_v29 }
 0x28c   : > { %1833 = vmatprep.subr.mxu1 %v2196_v19 }
 0x28d   : > { %1834 = vmatpush3.msra.mxu1 %v1314_v30 }
 0x28e   : > { %1835 = vmatprep.subr.mxu1 %v2196_v19 }
 0x28f   : > { %1836 = vmatpush3.msra.mxu1 %v1313_v31 }
 0x290   : > { %1837 = vmatprep.subr.mxu1 %v2196_v19 }
 0x291   : > { %1838 = vmatpush3.msra.mxu1 %v1312_v32 }
 0x292   : > { %1839 = vmatprep.subr.mxu1 %v2196_v19 }
 0x293   : > { %1840 = vmatpush3.msra.mxu1 %v1311_v33 }
 0x294   : > { %1841 = vmatprep.subr.mxu1 %v2196_v19 }
 0x295   : > { %1842 = vmatpush3.msra.mxu1 %v1310_v34 }
 0x296   : > { %1843 = vmatprep.subr.mxu1 %v2196_v19 }
 0x297   : > { %1844 = vmatpush3.msra.mxu1 %v1309_v35 }
 0x33b   : > { %v1297_v37 = vpop.f32.mrf.mxu0 }
 0x33c   : > { %v1303_v38 = vadd.f32 %v1297_v37, %v1261_v36 }
 0x33d   : > { %v1811_v39 = vpop.f32.mrf.mxu0 }
 0x33e   : > { %1304 = vst [vmem:[#allocation6] sm:$0xff] %v1303_v38  ;;  %1846 = vmatmul.mubr.f32.vlgmr.msra.gmra.mxu1 %v1303_v38 }
 0x33f   : > { %v1300_v40 = vpop.f32.mrf.mxu0 }
 0x341   : > { %v1812_v41 = vpop.f32.mrf.mxu0 }
 0x3fe   : > { %v1398_v43 = vpop.f32.mrf.mxu1 }
 0x3ff   : > { %v1399_v44 = vadd.f32 %v1614_v42, %v1398_v43 }
 0x400   : > { %v1847_v45 = vpop.f32.mrf.mxu1 }
 0x401   : > { %1402 = vst [vmem:[#allocation13] sm:$0xff] %v1399_v44 }
 0x402 PF: > { %p1878_p8 = scmp.eq.s32.totalorder %s2268_s30, 3  ;;  %s2198_s18 = smov [#allocation13]  }
 0x403   : > { %s1410_s16 = sshll.u32 %s2198_s18, 4  ;;  %s1411_s16 = int_to_ptr.vmem [resolvable:$true] %s1410_s16 }
 0x404   : > { %s2093_s19 = scalar_lea.vmem %s1411_s16, 128  ;;  %p2100_p0 = scmp.lt.s32.totalorder %s1411_s16, %s1411_s16 }
 0x405   : > { %p2094_p9 = scmp.ne.s32.totalorder %s1411_s16, %s2093_s19  ;;  %p2101_p2 = scmp.lt.s32.totalorder %s2093_s19, %s2093_s19 }
 0x407   : > { %p2095_p12 = pnand %p2094_p9, %p1878_p8  ;;  %p2102_p3 = por %p2101_p2, %p2100_p0 }
 0x409   : > { %p2096_p13 = pneg %p2095_p12 }
 0x40b   : > { %p2103_p6 = pnand %p2102_p3, %p2096_p13 }
 0x40d   : > { %2106 = shalt.err (!%p2103_p6)
}
 0x40e   : > { %1859 = dma.vmem_to_hbm [thread:$0]  (%p1878_p8), %s1411_s16, 128, %s2446_s7, [#allocation9]  }
 0x40f   : > { %2158 = dma.done.wait (%p1878_p8), [#allocation9], 128  }
 0x410   : > { %2160 = vsyncadd (%p1878_p8), [#allocation9], 4294967168 }
 0x411 PF: > { %s24_s29 = sadd.s32 1, %s2183_s29   ;;  %s2451_s24 = smov %s2167_s25 }
 0x412   : > { %p21_p7 = scmp.ge.s32.totalorder %s24_s29, 6   ;;  %s2452_s25 = smov %s2171_s26 }
 0x413   : > { %s2453_s26 = smov %s2306_s23  ;;  %s2454_s27 = smov %s2179_s28 }
 0x414   : > { %s2455_s28 = smov %s2457_s17  ;;  %23 = sbr.rel (!%p21_p7) target bundleno = 7 (0x7), region = 136 }
 0x419   :  { %1423 = vsyncpa [#allocation8], 1 }
 0x41a   :  { %1425 = vsyncpa [#allocation8 + $0x1], 1 }
 0x41b   :  { %1426 = vsyncpa [#allocation11], 1 }
 0x41c   :  { %1428 = vsyncpa [#allocation11 + $0x1], 1 }
 0x41d   :  { %1429 = vsyncpa [#allocation9], 1 }
 0x41e   :  { %1431 = vsyncpa [#allocation9 + $0x1], 1 }

</bundles_post_ra>
